<compile_context>
chip_gen: v7x
topology: tpu7x:2x2x1
jax: 0.10.0
libtpu: 0.0.40
codegen_flags: <defaults>
</compile_context>

<pallas_src>
import math

import jax
import jax.numpy as jnp
from jax.experimental import pallas as pl
from jax.experimental.pallas import tpu as pltpu


def _mix_kernel(mf_ref, a_ref, b_ref, o_ref):
    # mf_ref: (1,) f32 scalar in SMEM holding sigmoid(w), precomputed in the wrapper.
    mf = mf_ref[0]
    a = a_ref[...].astype(jnp.float32)
    b = b_ref[...].astype(jnp.float32)
    # lerp form: b + mf * (a - b)  ==  a * mf + b * (1 - mf)
    o_ref[...] = (b + mf * (a - b)).astype(o_ref.dtype)


def mix_forward(fea1, fea2, w):
    """fea1, fea2: tensors of identical shape (any layout, e.g. NCHW). w: (1,) float32."""
    assert fea1.shape == fea2.shape
    orig_shape = fea1.shape
    dtype = fea1.dtype
    total = int(fea1.size)

    # Hoist the scalar sigmoid out of the kernel (computed once on the host side of the
    # pallas_call; the kernel just reads the resulting SMEM scalar).
    mf = jax.nn.sigmoid(w.astype(jnp.float32)).reshape((1,))

    # ---- choose a lane-dense layout -------------------------------------------------
    # Target lane width: large multiple of 128 for wide unmasked stores; shrink for tiny
    # inputs so we don't over-pad.
    lane = 1024
    while lane > 128 and total < lane * 8:
        lane //= 2

    itemsize = jnp.dtype(dtype).itemsize
    # Per-input tile budget ~2 MiB -> 3 streams x 2 buffers = 12 MiB pipelined VMEM,
    # inside the scoped-VMEM default on all of v5e / v6e / v7x.
    max_tile_bytes = 2 * 1024 * 1024
    max_block_rows = max(8, (max_tile_bytes // (lane * itemsize)) // 8 * 8)

    flat1 = fea1.reshape(-1)
    flat2 = fea2.reshape(-1)

    # Pad the flat stream so it reshapes to (rows, lane) with rows a multiple of 8.
    chunk = lane * 8
    padded = pl.cdiv(total, chunk) * chunk
    rows = padded // lane

    block_rows = min(rows, max_block_rows)
    # Pad rows so the block divides evenly (keeps BlockSpec shapes fully tiled).
    rows_padded = pl.cdiv(rows, block_rows) * block_rows
    pad_elems = rows_padded * lane - total
    if pad_elems:
        flat1 = jnp.pad(flat1, (0, pad_elems))
        flat2 = jnp.pad(flat2, (0, pad_elems))

    a2 = flat1.reshape(rows_padded, lane)
    b2 = flat2.reshape(rows_padded, lane)

    grid = (rows_padded // block_rows,)

    out2 = pl.pallas_call(
        _mix_kernel,
        out_shape=jax.ShapeDtypeStruct((rows_padded, lane), dtype),
        grid_spec=pltpu.PrefetchScalarGridSpec(
            num_scalar_prefetch=0,
            grid=grid,
            in_specs=[
                pl.BlockSpec(memory_space=pltpu.SMEM),                    # sigmoid(w) scalar
                pl.BlockSpec((block_rows, lane), lambda i: (i, 0)),       # fea1 tile
                pl.BlockSpec((block_rows, lane), lambda i: (i, 0)),       # fea2 tile
            ],
            out_specs=pl.BlockSpec((block_rows, lane), lambda i: (i, 0)),
        ),
        compiler_params=pltpu.CompilerParams(
            # Parallel grid axis lets Mosaic shard the elementwise stream across both
            # TensorCores on v7x; neutral on v5e/v6e.
            dimension_semantics=("parallel",),
        ),
    )(mf, a2, b2)

    return out2.reshape(-1)[:total].reshape(orig_shape)


if __name__ == "__main__":
    key = jax.random.PRNGKey(0)
    k1, k2 = jax.random.split(key)

    # Small NCHW shapes consistent with the module's elementwise forward.
    N, C, H, W = 2, 4, 16, 16
    fea1 = jax.random.normal(k1, (N, C, H, W), dtype=jnp.float32)
    fea2 = jax.random.normal(k2, (N, C, H, W), dtype=jnp.float32)

    # Deterministic parameter init, matching nn.Parameter(torch.FloatTensor([m])), m=-0.8
    w = jnp.array([-0.8], dtype=jnp.float32)

    out = mix_forward(fea1, fea2, w)
    out = jax.block_until_ready(out)

    # Reference check (plain JAX, matching the PyTorch formula exactly).
    mf_ref = jax.nn.sigmoid(w[0])
    ref = fea1 * mf_ref + fea2 * (1.0 - mf_ref)
    assert jnp.allclose(out, ref, atol=1e-5, rtol=1e-5), "mismatch vs reference"

    print("KERNEL_OK")
</pallas_src>

<mosaic_0001>
module attributes {stable_mosaic.version = 11 : i64} {
  func.func @_mix_kernel(%arg0: i32, %arg1: memref<1xf32, #tpu.memory_space<smem>>, %arg2: memref<8x256xf32, #tpu.memory_space<vmem>>, %arg3: memref<8x256xf32, #tpu.memory_space<vmem>>, %arg4: memref<8x256xf32, #tpu.memory_space<vmem>>) attributes {dimension_semantics = [#tpu.dimension_semantics<parallel>], iteration_bounds = array<i64: 1>, scalar_prefetch = 0 : i64, scratch_operands = 0 : i64, tpu.core_type = #tpu.core_type<tc>, window_params = [{transform_indices = @transform_0, window_bounds = array<i64: 1>}, {transform_indices = @transform_1, window_bounds = array<i64: 8, 256>}, {transform_indices = @transform_2, window_bounds = array<i64: 8, 256>}, {transform_indices = @transform_3, window_bounds = array<i64: 8, 256>}]} {
    %c0 = arith.constant 0 : index
    %0 = memref.load %arg1[%c0] : memref<1xf32, #tpu.memory_space<smem>>
    %c0_0 = arith.constant 0 : index
    %c0_1 = arith.constant 0 : index
    %1 = vector.load %arg2[%c0_0, %c0_1] : memref<8x256xf32, #tpu.memory_space<vmem>>, vector<8x256xf32>
    %c0_2 = arith.constant 0 : index
    %c0_3 = arith.constant 0 : index
    %2 = vector.load %arg3[%c0_2, %c0_3] : memref<8x256xf32, #tpu.memory_space<vmem>>, vector<8x256xf32>
    %3 = arith.subf %1, %2 : vector<8x256xf32>
    %4 = vector.broadcast %0 : f32 to vector<8x256xf32>
    %5 = arith.mulf %4, %3 : vector<8x256xf32>
    %6 = arith.addf %2, %5 : vector<8x256xf32>
    %c0_4 = arith.constant 0 : index
    %c0_5 = arith.constant 0 : index
    %7 = vector.load %arg4[%c0_4, %c0_5] : memref<8x256xf32, #tpu.memory_space<vmem>>, vector<8x256xf32>
    tpu.vector_store %arg4[%c0_4, %c0_5], %6 {strides = array<i32>} : memref<8x256xf32, #tpu.memory_space<vmem>>, vector<8x256xf32>,
    return
  }
  func.func @transform_0(%arg0: i32) -> i32 {
    %c0_i32 = arith.constant 0 : i32
    %c0_i32_0 = arith.constant 0 : i32
    return %c0_i32 : i32
  }
  func.func @transform_1(%arg0: i32) -> (i32, i32) {
    %c0_i32 = arith.constant 0 : i32
    %c0_i32_0 = arith.constant 0 : i32
    return %arg0, %c0_i32 : i32, i32
  }
  func.func @transform_2(%arg0: i32) -> (i32, i32) {
    %c0_i32 = arith.constant 0 : i32
    %c0_i32_0 = arith.constant 0 : i32
    return %arg0, %c0_i32 : i32, i32
  }
  func.func @transform_3(%arg0: i32) -> (i32, i32) {
    %c0_i32 = arith.constant 0 : i32
    %c0_i32_0 = arith.constant 0 : i32
    return %arg0, %c0_i32 : i32, i32
  }
}

</mosaic_0001>

<bundles_post_ra>
// kernel: tpu_custom_call.1
= control target key start
LH: loop header
LB: loop body
LE: loop exit
PB: predicated region body
PF: predicated region fallthrough
CT: control target
= control target key end

     0   :  { %9 = vsyncpa [#allocation4], 0  ;;  %s207_s0 = inlined_call_operand.<no memory space> [shape: f32[1], index: 0, kind: input, shape index: {}]   ;;  %s208_s1 = inlined_call_operand.hbm [shape: f32[8,256], index: 1, kind: input, shape index: {}]   ;;  %s209_s2 = inlined_call_operand.hbm [shape: f32[8,256], index: 2, kind: input, shape index: {}]   ;;  %s210_s3 = inlined_call_operand.hbm [shape: f32[8,256], index: 3, kind: output, shape index: {}]  }
   0x1   :  { %10 = vsyncpa [#allocation7], 0 }
   0x2   :  { %11 = vsyncpa [#allocation5], 0  ;;  %s145_s12 = smov [#allocation3]   ;;  %s146_s14 = smov [#allocation6]  }
   0x3   :  { %s20_s13 = sshll.u32 %s145_s12, 4  ;;  %s30_s15 = sshll.u32 %s146_s14, 4  ;;  %s21_s13 = int_to_ptr.vmem [resolvable:$true] %s20_s13  ;;  %s31_s15 = int_to_ptr.vmem [resolvable:$true] %s30_s15 }
   0x4   :  { %s73_s18 = scalar_lea.hbm %s208_s1, 256 }
   0x5   :  { %p74_p0 = scmp.ne.s32.totalorder %s208_s1, %s73_s18  ;;  %p77_p1 = scmp.lt.u32.totalorder %s73_s18, %s208_s1 }
   0x7   :  { %p79_p2 = pnand %p77_p1, %p74_p0 }
   0x9   :  { %82 = shalt.err (!%p79_p2)
}
   0xa   :  { %s83_s23 = scalar_lea.vmem %s21_s13, 256  ;;  %p88_p4 = scmp.lt.s32.totalorder %s21_s13, %s21_s13 }
   0xb   :  { %p84_p3 = scmp.ne.s32.totalorder %s21_s13, %s83_s23  ;;  %p89_p5 = scmp.lt.s32.totalorder %s83_s23, %s83_s23 }
   0xd   :  { %p90_p6 = por %p89_p5, %p88_p4 }
   0xf   :  { %p91_p7 = pnand %p90_p6, %p84_p3 }
  0x11   :  { %94 = shalt.err (!%p91_p7)
}
  0x12   :  { %23 = dma.hbm_to_vmem [thread:$0]  %s208_s1, 256, %s21_s13, [#allocation4]  }
  0x13   :  { %s95_s28 = scalar_lea.hbm %s209_s2, 256 }
  0x14   :  { %p96_p8 = scmp.ne.s32.totalorder %s209_s2, %s95_s28  ;;  %p99_p9 = scmp.lt.u32.totalorder %s95_s28, %s209_s2 }
  0x16   :  { %p101_p10 = pnand %p99_p9, %p96_p8 }
  0x18   :  { %104 = shalt.err (!%p101_p10)
}
  0x19   :  { %s105_s6 = scalar_lea.vmem %s31_s15, 256  ;;  %p110_p12 = scmp.lt.s32.totalorder %s31_s15, %s31_s15 }
  0x1a   :  { %p106_p11 = scmp.ne.s32.totalorder %s31_s15, %s105_s6  ;;  %p111_p13 = scmp.lt.s32.totalorder %s105_s6, %s105_s6 }
  0x1c   :  { %p112_p0 = por %p111_p13, %p110_p12 }
  0x1e   :  { %p113_p1 = pnand %p112_p0, %p106_p11 }
  0x20   :  { %116 = shalt.err (!%p113_p1)
}
  0x21   :  { %33 = dma.hbm_to_vmem [thread:$0]  %s209_s2, 256, %s31_s15, [#allocation7]  }
  0x22   :  { %139 = dma.done.wait [#allocation4], 256  }
  0x23   :  { %140 = vsyncadd [#allocation4], 4294967040 }
  0x24   :  { %141 = dma.done.wait [#allocation7], 256  }
  0x25   :  { %142 = vsyncadd [#allocation7], 4294967040  ;;  %v41_v0 = vld [vmem:[#allocation3] sm:$0xff]  ;;  %v43_v1 = vld [vmem:[#allocation6] sm:$0xff]  ;;  %v47_v2 = vstv %s207_s0  ;;  %s147_s10 = smov [#allocation8]  }
  0x26   :  { %v42_v3 = vld [vmem:[#allocation3 + $0x8] sm:$0xff]  ;;  %v45_v4 = vsub.f32 %v41_v0, %v43_v1  ;;  %v44_v5 = vld [vmem:[#allocation6 + $0x8] sm:$0xff]  ;;  %s60_s11 = sshll.u32 %s147_s10, 4  ;;  %s61_s11 = int_to_ptr.vmem [resolvable:$true] %s60_s11 }
  0x27   :  { %v46_v6 = vsub.f32 %v42_v3, %v44_v5  ;;  %s117_s2 = scalar_lea.vmem %s61_s11, 256  ;;  %p122_p3 = scmp.lt.s32.totalorder %s61_s11, %s61_s11 }
  0x28   :  { %v48_v7 = vmul.f32 %v47_v2, %v45_v4  ;;  %p118_p2 = scmp.ne.s32.totalorder %s61_s11, %s117_s2  ;;  %p123_p4 = scmp.lt.s32.totalorder %s117_s2, %s117_s2 }
  0x29   :  { %v49_v8 = vmul.f32 %v47_v2, %v46_v6 }
  0x2a   :  { %v50_v9 = vadd.f32 %v48_v7, %v43_v1  ;;  %p124_p5 = por %p123_p4, %p122_p3 }
  0x2b   :  { %v51_v10 = vadd.f32 %v49_v8, %v44_v5 }
  0x2c   :  { %52 = vst [vmem:[#allocation8] sm:$0xff] %v50_v9  ;;  %p125_p6 = pnand %p124_p5, %p118_p2 }
  0x2d   :  { %53 = vst [vmem:[#allocation8 + $0x8] sm:$0xff] %v51_v10 }
  0x2e   :  { %128 = shalt.err (!%p125_p6)
}
  0x2f   :  { %s129_s13 = scalar_lea.hbm %s210_s3, 256 }
  0x30   :  { %p130_p7 = scmp.ne.s32.totalorder %s210_s3, %s129_s13  ;;  %p133_p8 = scmp.lt.u32.totalorder %s129_s13, %s210_s3 }
  0x32   :  { %p135_p9 = pnand %p133_p8, %p130_p7 }
  0x34   :  { %138 = shalt.err (!%p135_p9)
}
  0x35   :  { %63 = dma.vmem_to_hbm [thread:$0]  %s61_s11, 256, %s210_s3, [#allocation5]  }
  0x36   :  { %143 = dma.done.wait [#allocation5], 256  }
  0x37   :  { %144 = vsyncadd [#allocation5], 4294967040 }
  0x38   :  { %67 = vsyncpa [#allocation4], 1 }
  0x39   :  { %68 = vsyncpa [#allocation7], 1 }
  0x3a   :  { %69 = vsyncpa [#allocation5], 1 }

</bundles_post_ra>
